<compile_context>
chip_gen: v5e
topology: v5e:2x2
jax: 0.10.0
libtpu: 0.0.40
codegen_flags: <defaults>
</compile_context>

<pallas_src>
import functools
import math

import jax
import jax.numpy as jnp
from jax.experimental import pallas as pl
from jax.experimental.pallas import tpu as pltpu


def encoder_kernel(ids_ref, embproj_ref, poscat_ref, out1_ref, out2_ref, *,
                   tb, l1, l2):
    """One batch-tile of the fused encoder.

    ids_ref     : (TB*(L1+L2), 1) int32  concatenated token ids (streamed)
    embproj_ref : (V, H)          f32    (embedding * sqrt(D)) @ W   (VMEM resident)
    poscat_ref  : (L1+L2, H)      f32    [pos[:L1]; pos[:L2]] @ W    (VMEM resident)
    out1_ref    : (TB, L1, H)     f32
    out2_ref    : (TB, L2, H)     f32
    """
    lt = l1 + l2
    n = tb * lt
    V, H = embproj_ref.shape

    ids = ids_ref[...]                                            # (N, 1) int32

    # Embedding gather + scale + linear collapsed into a single MXU matmul
    # against the pre-projected table (exact: exactly one 1.0 per row).
    iota = jax.lax.broadcasted_iota(jnp.int32, (n, V), 1)         # (N, V)
    onehot = (iota == ids).astype(jnp.float32)                    # (N, V)
    y = jnp.dot(onehot, embproj_ref[...],
                preferred_element_type=jnp.float32)               # (N, H)

    # Add pre-projected positional rows and split back into sent1 / sent2.
    y3 = y.reshape(tb, lt, H) + poscat_ref[...][None, :, :]       # (TB, Lt, H)
    out1_ref[...] = y3[:, :l1, :].astype(out1_ref.dtype)
    out2_ref[...] = y3[:, l1:, :].astype(out2_ref.dtype)


def _pick_tb(batch, lt):
    """Batch tile: grow the MXU M dim (TB*Lt toward >=256), keep TB a multiple
    of 8 that divides B, and keep >= 2 grid steps so v7x's 2 TensorCores both
    get work on the 'parallel' batch axis."""
    if batch <= 8:
        return batch
    candidates = [tb for tb in range(8, batch // 2 + 1, 8) if batch % tb == 0]
    if not candidates:
        return batch
    preferred = [tb for tb in candidates if tb * lt >= 256]
    return min(preferred) if preferred else max(candidates)


def encoder_forward(sent1, sent2, params):
    """sent1: (B, L1) int32, sent2: (B, L2) int32 -> ((B, L1, H), (B, L2, H))."""
    emb = params["embedding"]          # (V, D)
    pos = params["pos_embedding"]      # (max_length, D)
    w = params["w"]                    # (D, H), pre-transposed Linear weight
    V, D = emb.shape
    H = w.shape[1]
    B, L1 = sent1.shape
    B2, L2 = sent2.shape
    assert B == B2, "sent1/sent2 batch mismatch"
    assert L1 <= pos.shape[0] and L2 <= pos.shape[0], "sentence longer than max_length"
    Lt = L1 + L2

    # ---- Algebraic fusion (the whole op is linear in the tables) ----
    scale = math.sqrt(float(D))
    hi = jax.lax.Precision.HIGHEST
    emb_proj = jnp.dot(emb * jnp.float32(scale), w, precision=hi)          # (V, H)
    pos_proj = jnp.dot(pos, w, precision=hi)                               # (max_len, H)
    pos_cat = jnp.concatenate([pos_proj[:L1], pos_proj[:L2]], axis=0)      # (Lt, H)

    # NOTE: like nn.Embedding with out-of-range indices, behaviour is undefined;
    # here an out-of-range id yields an all-zero embedding row instead of an error.
    ids_cat = jnp.concatenate(
        [sent1.astype(jnp.int32), sent2.astype(jnp.int32)], axis=1)        # (B, Lt)
    ids_flat = ids_cat.reshape(B * Lt, 1)                                  # (B*Lt, 1)

    TB = _pick_tb(B, Lt)
    grid = (B // TB,)
    TBL = TB * Lt

    kernel = functools.partial(encoder_kernel, tb=TB, l1=L1, l2=L2)

    flops = 2 * B * Lt * V * H
    bytes_accessed = 4 * (ids_flat.size + emb_proj.size + pos_cat.size + B * Lt * H)

    out1, out2 = pl.pallas_call(
        kernel,
        out_shape=(jax.ShapeDtypeStruct((B, L1, H), jnp.float32),
                   jax.ShapeDtypeStruct((B, L2, H), jnp.float32)),
        grid_spec=pltpu.PrefetchScalarGridSpec(
            num_scalar_prefetch=0,
            grid=grid,
            in_specs=[
                pl.BlockSpec((TBL, 1), lambda i: (i, 0)),     # token ids (streamed per tile)
                pl.BlockSpec((V, H), lambda i: (0, 0)),       # projected emb table (resident)
                pl.BlockSpec((Lt, H), lambda i: (0, 0)),      # projected pos rows (resident)
            ],
            out_specs=[
                pl.BlockSpec((TB, L1, H), lambda i: (i, 0, 0)),
                pl.BlockSpec((TB, L2, H), lambda i: (i, 0, 0)),
            ],
        ),
        compiler_params=pltpu.CompilerParams(
            dimension_semantics=("parallel",),      # batch tiles shard across TCs (v7x)
            vmem_limit_bytes=32 * 1024 * 1024,      # sized for the smallest VMEM (v7x)
        ),
        cost_estimate=pl.CostEstimate(
            flops=flops, transcendentals=0, bytes_accessed=bytes_accessed),
    )(ids_flat, emb_proj, pos_cat)

    return out1, out2


def encoder_reference(sent1, sent2, params):
    """Pure-JAX reference implementation for verification."""
    emb = params["embedding"]
    pos = params["pos_embedding"]
    w = params["w"]
    scale = jnp.float32(math.sqrt(float(emb.shape[1])))
    hi = jax.lax.Precision.HIGHEST

    def enc(ids):
        L = ids.shape[1]
        x = jnp.take(emb, ids, axis=0) * scale + pos[:L][None, :, :]
        return jnp.einsum("bld,dh->blh", x, w, precision=hi)

    return enc(sent1), enc(sent2)


def init_params(key, num_embeddings, embedding_size, hidden_size, max_length):
    ks = jax.random.split(key, 3)
    bound = 1.0 / math.sqrt(float(embedding_size))
    return {
        # nn.Embedding default init: N(0, 1)
        "embedding": jax.random.normal(
            ks[0], (num_embeddings, embedding_size), dtype=jnp.float32),
        "pos_embedding": jax.random.normal(
            ks[1], (max_length, embedding_size), dtype=jnp.float32),
        # nn.Linear weight, stored pre-transposed as (in_features, out_features).
        "w": jax.random.uniform(
            ks[2], (embedding_size, hidden_size),
            minval=-bound, maxval=bound, dtype=jnp.float32),
    }


if __name__ == "__main__":
    num_embeddings, embedding_size, hidden_size, max_length = 100, 64, 64, 32
    batch, len1, len2 = 16, 16, 8

    key = jax.random.PRNGKey(0)
    k1, k2, kp = jax.random.split(key, 3)
    sent1 = jax.random.randint(k1, (batch, len1), 0, num_embeddings, dtype=jnp.int32)
    sent2 = jax.random.randint(k2, (batch, len2), 0, num_embeddings, dtype=jnp.int32)
    params = init_params(kp, num_embeddings, embedding_size, hidden_size, max_length)

    out1, out2 = encoder_forward(sent1, sent2, params)
    out1, out2 = jax.block_until_ready((out1, out2))

    ref1, ref2 = encoder_reference(sent1, sent2, params)
    assert out1.shape == (batch, len1, hidden_size)
    assert out2.shape == (batch, len2, hidden_size)
    assert jnp.allclose(out1, ref1, atol=2e-3, rtol=1e-3), "sent1 mismatch vs reference"
    assert jnp.allclose(out2, ref2, atol=2e-3, rtol=1e-3), "sent2 mismatch vs reference"

    print("KERNEL_OK")
</pallas_src>

<mosaic_0001>
module attributes {stable_mosaic.version = 11 : i64} {
  func.func @encoder_kernel(%arg0: i32, %arg1: memref<192x1xi32, #tpu.memory_space<vmem>>, %arg2: memref<100x64xf32, #tpu.memory_space<vmem>>, %arg3: memref<24x64xf32, #tpu.memory_space<vmem>>, %arg4: memref<8x16x64xf32, #tpu.memory_space<vmem>>, %arg5: memref<8x8x64xf32, #tpu.memory_space<vmem>>) attributes {dimension_semantics = [#tpu.dimension_semantics<parallel>], iteration_bounds = array<i64: 2>, scalar_prefetch = 0 : i64, scratch_operands = 0 : i64, tpu.core_type = #tpu.core_type<tc>, window_params = [{transform_indices = @transform_0, window_bounds = array<i64: 192, 1>}, {pipeline_mode = #tpu.pipeline_mode<synchronous>, transform_indices = @transform_1, window_bounds = array<i64: 100, 64>}, {pipeline_mode = #tpu.pipeline_mode<synchronous>, transform_indices = @transform_2, window_bounds = array<i64: 24, 64>}, {transform_indices = @transform_3, window_bounds = array<i64: 8, 16, 64>}, {transform_indices = @transform_4, window_bounds = array<i64: 8, 8, 64>}]} {
    %c0 = arith.constant 0 : index
    %c0_0 = arith.constant 0 : index
    %0 = vector.load %arg1[%c0, %c0_0] : memref<192x1xi32, #tpu.memory_space<vmem>>, vector<192x1xi32>
    %1 = tpu.iota {dimensions = array<i32: 1>} : vector<192x100xi32>
    %2 = vector.broadcast %0 : vector<192x1xi32> to vector<192x100xi32>
    %3 = arith.cmpi eq, %1, %2 : vector<192x100xi32>
    %4 = arith.extui %3 : vector<192x100xi1> to vector<192x100xi32>
    %5 = arith.sitofp %4 : vector<192x100xi32> to vector<192x100xf32>
    %c0_1 = arith.constant 0 : index
    %c0_2 = arith.constant 0 : index
    %6 = vector.load %arg2[%c0_1, %c0_2] : memref<100x64xf32, #tpu.memory_space<vmem>>, vector<100x64xf32>
    %cst = arith.constant dense<0.000000e+00> : vector<192x64xf32>
    %7 = tpu.matmul %5, %6, %cst {dimension_numbers = #tpu.dot_dimension_numbers<[1], [0], [0], [1], [0, 0, 1, 1], [], []>} : vector<192x100xf32>, vector<100x64xf32>, vector<192x64xf32> -> vector<192x64xf32>
    %8 = vector.shape_cast %7 : vector<192x64xf32> to vector<8x24x64xf32>
    %c0_3 = arith.constant 0 : index
    %c0_4 = arith.constant 0 : index
    %9 = vector.load %arg3[%c0_3, %c0_4] : memref<24x64xf32, #tpu.memory_space<vmem>>, vector<24x64xf32>
    %10 = vector.shape_cast %9 : vector<24x64xf32> to vector<1x24x64xf32>
    %11 = vector.broadcast %10 : vector<1x24x64xf32> to vector<8x24x64xf32>
    %12 = arith.addf %8, %11 : vector<8x24x64xf32>
    %13 = vector.extract_strided_slice %12 {offsets = [0, 0, 0], sizes = [8, 16, 64], strides = [1, 1, 1]} : vector<8x24x64xf32> to vector<8x16x64xf32>
    %c0_5 = arith.constant 0 : index
    %c0_6 = arith.constant 0 : index
    %c0_7 = arith.constant 0 : index
    %14 = vector.load %arg4[%c0_5, %c0_6, %c0_7] : memref<8x16x64xf32, #tpu.memory_space<vmem>>, vector<8x16x64xf32>
    tpu.vector_store %arg4[%c0_5, %c0_6, %c0_7], %13 {strides = array<i32>} : memref<8x16x64xf32, #tpu.memory_space<vmem>>, vector<8x16x64xf32>,
    %15 = vector.extract_strided_slice %12 {offsets = [0, 16, 0], sizes = [8, 8, 64], strides = [1, 1, 1]} : vector<8x24x64xf32> to vector<8x8x64xf32>
    %c0_8 = arith.constant 0 : index
    %c0_9 = arith.constant 0 : index
    %c0_10 = arith.constant 0 : index
    %16 = vector.load %arg5[%c0_8, %c0_9, %c0_10] : memref<8x8x64xf32, #tpu.memory_space<vmem>>, vector<8x8x64xf32>
    tpu.vector_store %arg5[%c0_8, %c0_9, %c0_10], %15 {strides = array<i32>} : memref<8x8x64xf32, #tpu.memory_space<vmem>>, vector<8x8x64xf32>,
    return
  }
  func.func @transform_0(%arg0: i32) -> (i32, i32) {
    %c0_i32 = arith.constant 0 : i32
    %c0_i32_0 = arith.constant 0 : i32
    return %arg0, %c0_i32 : i32, i32
  }
  func.func @transform_1(%arg0: i32) -> (i32, i32) {
    %c0_i32 = arith.constant 0 : i32
    %c0_i32_0 = arith.constant 0 : i32
    %c0_i32_1 = arith.constant 0 : i32
    return %c0_i32, %c0_i32_0 : i32, i32
  }
  func.func @transform_2(%arg0: i32) -> (i32, i32) {
    %c0_i32 = arith.constant 0 : i32
    %c0_i32_0 = arith.constant 0 : i32
    %c0_i32_1 = arith.constant 0 : i32
    return %c0_i32, %c0_i32_0 : i32, i32
  }
  func.func @transform_3(%arg0: i32) -> (i32, i32, i32) {
    %c0_i32 = arith.constant 0 : i32
    %c0_i32_0 = arith.constant 0 : i32
    %c0_i32_1 = arith.constant 0 : i32
    return %arg0, %c0_i32, %c0_i32_0 : i32, i32, i32
  }
  func.func @transform_4(%arg0: i32) -> (i32, i32, i32) {
    %c0_i32 = arith.constant 0 : i32
    %c0_i32_0 = arith.constant 0 : i32
    %c0_i32_1 = arith.constant 0 : i32
    return %arg0, %c0_i32, %c0_i32_0 : i32, i32, i32
  }
}

</mosaic_0001>

<bundles_post_ra>
// kernel: tpu_custom_call.1
= control target key start
LH: loop header
LB: loop body
LE: loop exit
PB: predicated region body
PF: predicated region fallthrough
CT: control target
= control target key end

     0   :  { %10 = vsyncpa [#allocation3], 0  ;;  %s1351_s0 = inlined_call_operand.vmem [shape: s32[384,1], index: 0, kind: input, shape index: {}]   ;;  %s1352_s1 = inlined_call_operand.vmem [shape: f32[100,64], index: 1, kind: input, shape index: {}]   ;;  %s1353_s2 = inlined_call_operand.vmem [shape: f32[24,64], index: 2, kind: input, shape index: {}]   ;;  %s1354_s3 = inlined_call_operand.hbm [shape: f32[16,16,64], index: 3, kind: output, shape index: {0}]   ;;  %s1355_s4 = inlined_call_operand.hbm [shape: f32[16,8,64], index: 4, kind: output, shape index: {1}]  }
   0x1   :  { %12 = vsyncpa [#allocation3 + $0x1], 0 }
   0x2   :  { %13 = vsyncpa [#allocation5], 0 }
   0x3   :  { %15 = vsyncpa [#allocation5 + $0x1], 0  ;;  %s1029_s15 = smov 0   ;;  %s1031_s16 = smov 0  }
   0x4   :  { %s1033_s17 = smov 0   ;;  %s1035_s18 = smov 0  }
   0x5 LB: > { %s1050_s19 = sadd.s32 4294967295, %s998_s18   ;;  %s746_s20 = sadd.s32 4294967294, %s998_s18   ;;  %s998_s18 = sphi %s1035_s18, %s1361_s18   ;;  %s994_s17 = sphi %s1033_s17, %s1360_s17   ;;  %s990_s16 = sphi %s1031_s16, %s1359_s16   ;;  %s986_s15 = sphi %s1029_s15, %s1358_s15  }
   0x6   : > { %s1054_s21 = sadd.s32 1, %s998_s18   ;;  %s96_s22 = sadd.s32 1, %s994_s17 }
   0x7   : > { %s93_s23 = ssub.s32 %s998_s18, %s1054_s21  ;;  %p106_p0 = scmp.ne.s32.totalorder %s994_s17, %s990_s16 }
   0x8   : > { %p94_p1 = scmp.eq.s32.totalorder %s93_s23, 0  ;;  %p107_p2 = scmp.eq.s32.totalorder %s1050_s19, 1 }
   0x9   : > { %p112_p3 = scmp.ne.s32.totalorder %s990_s16, %s986_s15  ;;  %p113_p4 = scmp.eq.s32.totalorder %s746_s20, 1 }
   0xa   : > { %s1065_s24 = scalar_select %p94_p1, %s994_s17, %s96_s22  }
   0xb   : > { %p1067_p5 = por %p107_p2, %p106_p0  ;;  %p1071_p6 = por %p113_p4, %p112_p3 }
   0xc   : > { %p749_p7 = scmp.ge.s32.totalorder %s998_s18, 1  ;;  %p172_p8 = scmp.lt.s32.totalorder %s998_s18, 3 }
   0xe   : > { %p173_p9 = pnand %p749_p7, %p172_p8 }
   0xf   : > { %s203_s27 = smul.u32 (!%p173_p9), 24, %s1050_s19  ;;  %s1221_s20 = sand.u32 (!%p173_p9), 1, %s990_s16  }
  0x10   : > { %176 = sbr.rel (%p173_p9) target bundleno = 338 (0x152), region = 32  ;;  %s750_s22 = sshll.u32 (!%p173_p9), %s1221_s20, 7 }
  0x11   : > { %p204_p10 = scmp.lt.s32.totalorder (!%p173_p9), %s203_s27, 47  ;;  %s812_s9 = sshll.u32 (!%p173_p9), %s1050_s19, 7 }
  0x12   : > { %s630_s12 = scalar_lea.hbm (!%p173_p9), %s1354_s3, %s812_s9  ;;  %s613_s23 = scalar_lea.sflag (!%p173_p9), [#allocation3], %s1221_s20 }
  0x13   : > { %s633_s14 = sshll.u32 (!%p173_p9), %s630_s12, 4  ;;  %s924_s6 = scalar_lea.hbm (!%p173_p9), %s1354_s3, 256  ;;  %s634_s14 = int_to_ptr.hbm [resolvable:$true] %s633_s14 }
  0x15   : > { %v1000_v0 = vmov 0   ;;  %s1363_s27 = smov (!%p204_p10, %s203_s27), 47  ;;  %v393_v25 = vld [vmem:[%s1352_s1 + $0x60] sm:$0xf]  ;;  %vm467_vm0 = vcmask 1043456   ;;  %v392_v26 = vld [vmem:[%s1352_s1 + $0x58] sm:$0xff]  ;;  %v235_v39 = vlaneseq }
  0x16   : > { %903 = vset.pattern.permute.xlu2 %v1000_v0  ;;  %902 = vset.pattern.permute.xlu1 %v1000_v0  ;;  %s752_s28 = sshll.u32 %s1363_s27, 3  ;;  %v391_v27 = vld [vmem:[%s1352_s1 + $0x50] sm:$0xff]  ;;  %v390_v28 = vld [vmem:[%s1352_s1 + $0x48] sm:$0xff]  ;;  %v389_v29 = vld [vmem:[%s1352_s1 + $0x40] sm:$0xff]  ;;  %vm394_vm1 = vcmask 818176   ;;  %v1001_v44 = vmov 0.0  }
  0x17   : > { %901 = vset.pattern.permute.xlu0 %v1000_v0  ;;  %s1081_s5 = scalar_lea.vmem %s1351_s0, %s752_s28  ;;  %815 = vmatpush.msk.msra.mxu2 %vm467_vm0, %v393_v25  ;;  %v388_v30 = vld [vmem:[%s1352_s1 + $0x38] sm:$0xff]  ;;  %v387_v31 = vld [vmem:[%s1352_s1 + $0x30] sm:$0xff]  ;;  %v386_v32 = vld [vmem:[%s1352_s1 + $0x28] sm:$0xff]  ;;  %v1146_v41 = vand.u32 127, %v235_v39  ;;  %s1227_s28 = scalar_lea.vmem [#allocation2], %s750_s22 }
  0x18   : > { %v224_v1 = vld [vmem:[%s1081_s5 + $0x68] sm:$0xff]  ;;  %v223_v2 = vld [vmem:[%s1081_s5 + $0x60] sm:$0xff]  ;;  %v230_v4 = vld [vmem:[%s1081_s5 + $0x98] sm:$0xff]  ;;  %777 = vmatpush.msk.msra.mxu0 %vm467_vm0, %v393_v25  ;;  %814 = vmatpush.msk.msra.mxu1 %vm467_vm0, %v393_v25  ;;  %s631_s13 = sshll.u32 %s1227_s28, 4  ;;  %s813_s22 = sshll.u32 %s1050_s19, 6  ;;  %s632_s13 = int_to_ptr.vmem [resolvable:$true] %s631_s13 }
  0x19   : > { %v211_v3 = vld [vmem:[%s1081_s5] sm:$0xff]  ;;  %277 = vperm.xlu2 %903, %v224_v1   ;;  %274 = vperm.xlu0 %901, %v223_v2   ;;  %v229_v5 = vld [vmem:[%s1081_s5 + $0x90] sm:$0xff]  ;;  %v212_v8 = vld [vmem:[%s1081_s5 + $0x8] sm:$0xff]  ;;  %s918_s27 = sshra.s32 %s634_s14, 4  ;;  %s919_s27 = int_to_ptr.hbm [resolvable:$true] %s918_s27 }
  0x1a   : > { %238 = vperm.xlu1 %902, %v211_v3   ;;  %v217_v6 = vld [vmem:[%s1081_s5 + $0x30] sm:$0xff]  ;;  %v218_v9 = vld [vmem:[%s1081_s5 + $0x38] sm:$0xff]  ;;  %v219_v10 = vld [vmem:[%s1081_s5 + $0x40] sm:$0xff]  ;;  %816 = vmatpush.msk.msra.mxu3 %vm467_vm0, %v393_v25  ;;  %s920_s29 = scalar_lea.hbm %s919_s27, 128  ;;  %p925_p0 = scmp.lt.s32.totalorder %s919_s27, %s1354_s3 }
  0x1b   : > { %v225_v7 = vld [vmem:[%s1081_s5 + $0x70] sm:$0xff]  ;;  %v231_v11 = vld [vmem:[%s1081_s5 + $0xa0] sm:$0xff]  ;;  %v214_v13 = vld [vmem:[%s1081_s5 + $0x18] sm:$0xff]  ;;  %818 = vmatpush.msra.mxu2 %v392_v26  ;;  %475 = vmatpush.msra.mxu0 %v392_v26  ;;  %p921_p11 = scmp.ne.s32.totalorder %s919_s27, %s920_s29  ;;  %p926_p1 = scmp.lt.s32.totalorder %s924_s6, %s920_s29 }
  0x1c   : > { %v213_v12 = vld [vmem:[%s1081_s5 + $0x10] sm:$0xff]  ;;  %v226_v14 = vld [vmem:[%s1081_s5 + $0x78] sm:$0xff]  ;;  %v232_v15 = vld [vmem:[%s1081_s5 + $0xa8] sm:$0xff]  ;;  %817 = vmatpush.msra.mxu1 %v392_v26  ;;  %819 = vmatpush.msra.mxu3 %v392_v26 }
  0x1d   : > { %v233_v16 = vld [vmem:[%s1081_s5 + $0xb0] sm:$0xff]  ;;  %v220_v17 = vld [vmem:[%s1081_s5 + $0x48] sm:$0xff]  ;;  %v227_v18 = vld [vmem:[%s1081_s5 + $0x80] sm:$0xff]  ;;  %821 = vmatpush.msra.mxu2 %v391_v27  ;;  %476 = vmatpush.msra.mxu0 %v391_v27  ;;  %p922_p12 = pnand %p921_p11, %p1067_p5  ;;  %p927_p2 = por %p926_p1, %p925_p0 }
  0x1e   : > { %v228_v19 = vld [vmem:[%s1081_s5 + $0x88] sm:$0xff]  ;;  %v215_v20 = vld [vmem:[%s1081_s5 + $0x20] sm:$0xff]  ;;  %v221_v21 = vld [vmem:[%s1081_s5 + $0x50] sm:$0xff]  ;;  %820 = vmatpush.msra.mxu1 %v391_v27  ;;  %822 = vmatpush.msra.mxu3 %v391_v27 }
  0x1f   : > { %v222_v22 = vld [vmem:[%s1081_s5 + $0x58] sm:$0xff]  ;;  %v216_v24 = vld [vmem:[%s1081_s5 + $0x28] sm:$0xff]  ;;  %824 = vmatpush.msra.mxu2 %v390_v28  ;;  %477 = vmatpush.msra.mxu0 %v390_v28  ;;  %v385_v33 = vld [vmem:[%s1352_s1 + $0x20] sm:$0xff]  ;;  %p923_p13 = pneg %p922_p12 }
  0x20   : > { %v234_v23 = vld [vmem:[%s1081_s5 + $0xb8] sm:$0xff]  ;;  %823 = vmatpush.msra.mxu1 %v390_v28  ;;  %825 = vmatpush.msra.mxu3 %v390_v28  ;;  %v383_v35 = vld [vmem:[%s1352_s1 + $0x10] sm:$0xff]  ;;  %v382_v36 = vld [vmem:[%s1352_s1 + $0x8] sm:$0xff]  ;;  %s751_s5 = sshll.u32 %s1221_s20, 6 }
  0x21   : > { %295 = vperm.xlu2 %903, %v230_v4   ;;  %292 = vperm.xlu0 %901, %v229_v5   ;;  %v384_v34 = vld [vmem:[%s1352_s1 + $0x18] sm:$0xff]  ;;  %v381_v37 = vld [vmem:[%s1352_s1] sm:$0xff]  ;;  %s1253_s8 = scalar_lea.vmem [#allocation4], %s751_s5  ;;  %p928_p3 = pnand %p927_p2, %p923_p13 }
  0x22   : > { %256 = vperm.xlu1 %902, %v217_v6   ;;  %827 = vmatpush.msra.mxu2 %v389_v29  ;;  %v560_v25 = vld [vmem:[%s1353_s2] sm:$0xff] }
  0x23   : > { %478 = vmatpush.msra.mxu0 %v389_v29  ;;  %826 = vmatpush.msra.mxu1 %v389_v29 }
  0x24   : > { %828 = vmatpush.msra.mxu3 %v389_v29  ;;  %830 = vmatpush.msra.mxu2 %v388_v30 }
  0x25   : > { %479 = vmatpush.msra.mxu0 %v388_v30  ;;  %829 = vmatpush.msra.mxu1 %v388_v30 }
  0x26   : > { %831 = vmatpush.msra.mxu3 %v388_v30  ;;  %833 = vmatpush.msra.mxu2 %v387_v31 }
  0x27   : > { %480 = vmatpush.msra.mxu0 %v387_v31  ;;  %832 = vmatpush.msra.mxu1 %v387_v31 }
  0x28   : > { %834 = vmatpush.msra.mxu3 %v387_v31  ;;  %836 = vmatpush.msra.mxu2 %v386_v32 }
  0x29   : > { %280 = vperm.xlu2 %903, %v225_v7   ;;  %241 = vperm.xlu0 %901, %v212_v8  }
  0x2a   : > { %259 = vperm.xlu1 %902, %v218_v9   ;;  %481 = vmatpush.msra.mxu0 %v386_v32 }
  0x2b   : > { %835 = vmatpush.msra.mxu1 %v386_v32  ;;  %837 = vmatpush.msra.mxu3 %v386_v32  ;;  %v561_v32 = vld [vmem:[%s1353_s2 + $0x8] sm:$0xff] }
  0x2c   : > { %839 = vmatpush.msra.mxu2 %v385_v33  ;;  %482 = vmatpush.msra.mxu0 %v385_v33 }
  0x2d   : > { %838 = vmatpush.msra.mxu1 %v385_v33  ;;  %840 = vmatpush.msra.mxu3 %v385_v33 }
  0x2e   : > { %842 = vmatpush.msra.mxu2 %v384_v34  ;;  %483 = vmatpush.msra.mxu0 %v384_v34 }
  0x2f   : > { %841 = vmatpush.msra.mxu1 %v384_v34  ;;  %843 = vmatpush.msra.mxu3 %v384_v34 }
  0x30   : > { %845 = vmatpush.msra.mxu2 %v383_v35  ;;  %484 = vmatpush.msra.mxu0 %v383_v35 }
  0x31   : > { %262 = vperm.xlu2 %903, %v219_v10   ;;  %298 = vperm.xlu0 %901, %v231_v11  }
  0x32   : > { %244 = vperm.xlu1 %902, %v213_v12   ;;  %844 = vmatpush.msra.mxu1 %v383_v35 }
  0x33   : > { %846 = vmatpush.msra.mxu3 %v383_v35  ;;  %848 = vmatpush.msra.mxu2 %v382_v36 }
  0x34   : > { %485 = vmatpush.msra.mxu0 %v382_v36  ;;  %847 = vmatpush.msra.mxu1 %v382_v36 }
  0x35   : > { %849 = vmatpush.msra.mxu3 %v382_v36  ;;  %851 = vmatpush.msra.mxu2 %v381_v37 }
  0x36   : > { %486 = vmatpush.msra.mxu0 %v381_v37  ;;  %850 = vmatpush.msra.mxu1 %v381_v37 }
  0x37   : > { %852 = vmatpush.msra.mxu3 %v381_v37 }
  0x39   : > { %247 = vperm.xlu2 %903, %v214_v13   ;;  %283 = vperm.xlu0 %901, %v226_v14  }
  0x3a   : > { %301 = vperm.xlu1 %902, %v232_v15  }
  0x41   : > { %304 = vperm.xlu2 %903, %v233_v16   ;;  %265 = vperm.xlu0 %901, %v220_v17  }
  0x42   : > { %286 = vperm.xlu1 %902, %v227_v18  }
  0x49   : > { %289 = vperm.xlu2 %903, %v228_v19   ;;  %250 = vperm.xlu0 %901, %v215_v20  }
  0x4a   : > { %268 = vperm.xlu1 %902, %v221_v21  }
  0x51   : > { %271 = vperm.xlu2 %903, %v222_v22   ;;  %307 = vperm.xlu0 %901, %v234_v23  }
  0x52   : > { %253 = vperm.xlu1 %902, %v216_v24  }
  0x73   : > { %v278_v38 = vpop.permute.xlu2 %277 }
  0x74   : > { %vm322_vm4 = vcmp.eq.s32.totalorder %v1146_v41, %v278_v38 }
  0x75   : > { %v766_v50 = vsel %vm322_vm4, 1.0, %v1001_v44 }
  0x7b   : > { %v296_v40 = vpop.permute.xlu2 %295 }
  0x7c   : > { %vm328_vm8 = vcmp.eq.s32.totalorder %v1146_v41, %v296_v40 }
  0x7d   : > { %v772_v58 = vsel %vm328_vm8, 1.0, %v1001_v44 }
  0x83   : > { %v281_v46 = vpop.permute.xlu2 %280 }
  0x84   : > { %vm323_vm7 = vcmp.eq.s32.totalorder %v1146_v41, %v281_v46 }
  0x85   : > { %v767_v56 = vsel %vm323_vm7, 1.0, %v1001_v44 }
  0x8b   : > { %v275_v42 = vpop.permute.xlu0 %274  ;;  %v263_v53 = vpop.permute.xlu2 %262 }
  0x8c   : > { %vm321_vm2 = vcmp.eq.s32.totalorder %v1146_v41, %v275_v42  ;;  %v239_v43 = vpop.permute.xlu1 %238  ;;  %vm317_vm11 = vcmp.eq.s32.totalorder %v1146_v41, %v263_v53 }
  0x8d   : > { %v765_v45 = vsel %vm321_vm2, 1.0, %v1001_v44  ;;  %vm309_vm3 = vcmp.eq.s32.totalorder %v1146_v41, %v239_v43  ;;  %v761_v0 = vsel %vm317_vm11, 1.0, %v1001_v44  ;;  %vm587_vm11 = vcmask 523264  }
  0x8e   : > { %v753_v47 = vsel %vm309_vm3, 1.0, %v1001_v44  ;;  %790 = vmatmul.msk.f32.vlgmr.msra.gmra.mxu2 %vm394_vm1, %v765_v45 }
  0x8f   : > { %778 = vmatmul.msk.f32.vlgmr.msra.gmra.mxu0 %vm394_vm1, %v753_v47 }
  0x93   : > { %v293_v48 = vpop.permute.xlu0 %292  ;;  %v248_v60 = vpop.permute.xlu2 %247 }
  0x94   : > { %vm327_vm5 = vcmp.eq.s32.totalorder %v1146_v41, %v293_v48  ;;  %v257_v49 = vpop.permute.xlu1 %256  ;;  %vm312_vm14 = vcmp.eq.s32.totalorder %v1146_v41, %v248_v60 }
  0x95   : > { %v771_v51 = vsel %vm327_vm5, 1.0, %v1001_v44  ;;  %vm315_vm6 = vcmp.eq.s32.totalorder %v1146_v41, %v257_v49  ;;  %v756_v6 = vsel %vm312_vm14, 1.0, %v1001_v44 }
  0x96   : > { %v759_v52 = vsel %vm315_vm6, 1.0, %v1001_v44  ;;  %791 = vmatmul.msk.f32.gmra.mxu2 %vm394_vm1, %v766_v50  ;;  %796 = vmatmul.msk.f32.vlgmr.msra.gmra.mxu3 %vm394_vm1, %v771_v51 }
  0x97   : > { %784 = vmatmul.msk.f32.vlgmr.msra.gmra.mxu1 %vm394_vm1, %v759_v52 }
  0x9b   : > { %v242_v54 = vpop.permute.xlu0 %241  ;;  %v305_v3 = vpop.permute.xlu2 %304 }
  0x9c   : > { %vm310_vm9 = vcmp.eq.s32.totalorder %v1146_v41, %v242_v54  ;;  %v260_v55 = vpop.permute.xlu1 %259  ;;  %vm331_vm2 = vcmp.eq.s32.totalorder %v1146_v41, %v305_v3 }
  0x9d   : > { %v754_v57 = vsel %vm310_vm9, 1.0, %v1001_v44  ;;  %vm316_vm10 = vcmp.eq.s32.totalorder %v1146_v41, %v260_v55  ;;  %v775_v13 = vsel %vm331_vm2, 1.0, %v1001_v44 }
  0x9e   : > { %v760_v59 = vsel %vm316_vm10, 1.0, %v1001_v44  ;;  %779 = vmatmul.msk.f32.gmra.mxu0 %vm394_vm1, %v754_v57  ;;  %792 = vmatmul.msk.f32.gmra.mxu2 %vm394_vm1, %v767_v56 }
  0x9f   : > { %785 = vmatmul.msk.f32.gmra.mxu1 %vm394_vm1, %v760_v59  ;;  %797 = vmatmul.msk.f32.gmra.mxu3 %vm394_vm1, %v772_v58 }
  0xa3   : > { %v299_v61 = vpop.permute.xlu0 %298  ;;  %v290_v11 = vpop.permute.xlu2 %289 }
  0xa4   : > { %vm329_vm12 = vcmp.eq.s32.totalorder %v1146_v41, %v299_v61  ;;  %v245_v62 = vpop.permute.xlu1 %244  ;;  %vm326_vm5 = vcmp.eq.s32.totalorder %v1146_v41, %v290_v11 }
  0xa5   : > { %v773_v63 = vsel %vm329_vm12, 1.0, %v1001_v44  ;;  %vm311_vm13 = vcmp.eq.s32.totalorder %v1146_v41, %v245_v62  ;;  %v770_v17 = vsel %vm326_vm5, 1.0, %v1001_v44 }
  0xa6   : > { %v755_v1 = vsel %vm311_vm13, 1.0, %v1001_v44 }
  0xa7   : > { %780 = vmatmul.msk.f32.gmra.mxu0 %vm394_vm1, %v755_v1  ;;  %786 = vmatmul.msk.f32.gmra.mxu1 %vm394_vm1, %v761_v0 }
  0xa8   : > { %798 = vmatmul.msk.f32.gmra.mxu3 %vm394_vm1, %v773_v63 }
  0xab   : > { %v284_v2 = vpop.permute.xlu0 %283  ;;  %v272_v19 = vpop.permute.xlu2 %271 }
  0xac   : > { %vm324_vm15 = vcmp.eq.s32.totalorder %v1146_v41, %v284_v2  ;;  %v302_v4 = vpop.permute.xlu1 %301  ;;  %vm320_vm8 = vcmp.eq.s32.totalorder %v1146_v41, %v272_v19 }
  0xad   : > { %v768_v5 = vsel %vm324_vm15, 1.0, %v1001_v44  ;;  %vm330_vm0 = vcmp.eq.s32.totalorder %v1146_v41, %v302_v4  ;;  %v764_v23 = vsel %vm320_vm8, 1.0, %v1001_v44 }
  0xae   : > { %v774_v7 = vsel %vm330_vm0, 1.0, %v1001_v44  ;;  %793 = vmatmul.msk.f32.gmra.mxu2 %vm394_vm1, %v768_v5 }
  0xaf   : > { %781 = vmatmul.msk.f32.gmra.mxu0 %vm394_vm1, %v756_v6 }
  0xb0   : > { %799 = vmatmul.msk.f32.gmra.mxu3 %vm394_vm1, %v774_v7 }
  0xb3   : > { %v266_v8 = vpop.permute.xlu0 %265 }
  0xb4   : > { %vm318_vm3 = vcmp.eq.s32.totalorder %v1146_v41, %v266_v8  ;;  %v287_v9 = vpop.permute.xlu1 %286 }
  0xb5   : > { %v762_v10 = vsel %vm318_vm3, 1.0, %v1001_v44  ;;  %vm325_vm4 = vcmp.eq.s32.totalorder %v1146_v41, %v287_v9 }
  0xb6   : > { %v769_v12 = vsel %vm325_vm4, 1.0, %v1001_v44  ;;  %787 = vmatmul.msk.f32.gmra.mxu1 %vm394_vm1, %v762_v10 }
  0xb7   : > { %794 = vmatmul.msk.f32.gmra.mxu2 %vm394_vm1, %v769_v12 }
  0xb8   : > { %800 = vmatmul.msk.f32.gmra.mxu3 %vm394_vm1, %v775_v13 }
  0xbb   : > { %v251_v14 = vpop.permute.xlu0 %250 }
  0xbc   : > { %vm313_vm6 = vcmp.eq.s32.totalorder %v1146_v41, %v251_v14  ;;  %v269_v15 = vpop.permute.xlu1 %268 }
  0xbd   : > { %v757_v16 = vsel %vm313_vm6, 1.0, %v1001_v44  ;;  %vm319_vm7 = vcmp.eq.s32.totalorder %v1146_v41, %v269_v15 }
  0xbe   : > { %v763_v18 = vsel %vm319_vm7, 1.0, %v1001_v44  ;;  %782 = vmatmul.msk.f32.gmra.mxu0 %vm394_vm1, %v757_v16 }
  0xbf   : > { %788 = vmatmul.msk.f32.gmra.mxu1 %vm394_vm1, %v763_v18  ;;  %795 = vmatmul.msk.f32.gmra.mxu2 %vm394_vm1, %v770_v17 }
  0xc3   : > { %v308_v20 = vpop.permute.xlu0 %307 }
  0xc4   : > { %vm332_vm9 = vcmp.eq.s32.totalorder %v1146_v41, %v308_v20  ;;  %v254_v21 = vpop.permute.xlu1 %253 }
  0xc5   : > { %v776_v22 = vsel %vm332_vm9, 1.0, %v1001_v44  ;;  %vm314_vm10 = vcmp.eq.s32.totalorder %v1146_v41, %v254_v21  ;;  %v1250_v41 = vld [vmem:[%s1353_s2 + $0x10] sm:$0xff] }
  0xc6   : > { %v758_v24 = vsel %vm314_vm10, 1.0, %v1001_v44  ;;  %801 = vmatmul.msk.f32.gmra.mxu3 %vm394_vm1, %v776_v22 }
  0xc7   : > { %783 = vmatmul.msk.f32.gmra.mxu0 %vm394_vm1, %v758_v24  ;;  %789 = vmatmul.msk.f32.gmra.mxu1 %vm394_vm1, %v764_v23 }
 0x10c   : > { %v488_v26 = vpop.f32.mrf.mxu0 }
 0x10d   : > { %v563_v27 = vadd.f32 %v560_v25, %v488_v26 }
 0x10f   : > { %588 = vst.msk [vmem:[%s1227_s28] sm:$0xff] %vm587_vm11, %v563_v27 }
 0x111   : > { %v524_v28 = vpop.f32.mrf.mxu2 }
 0x112   : > { %v575_v29 = vadd.f32 %v560_v25, %v524_v28 }
 0x114   : > { %596 = vst.msk [vmem:[%s1227_s28 + $0x40] sm:$0xff] %vm587_vm11, %v575_v29  ;;  %v506_v30 = vpop.f32.mrf.mxu1 }
 0x115   : > { %v569_v31 = vadd.f32 %v560_v25, %v506_v30 }
 0x117   : > { %592 = vst.msk [vmem:[%s1227_s28 + $0x20] sm:$0xff] %vm587_vm11, %v569_v31 }
 0x119   : > { %v527_v33 = vpop.f32.mrf.mxu2  ;;  %v542_v34 = vpop.f32.mrf.mxu3 }
 0x11a   : > { %v576_v35 = vadd.f32 %v561_v32, %v527_v33  ;;  %v581_v36 = vadd.f32 %v560_v25, %v542_v34 }
 0x11b   : > { %v491_v37 = vpop.f32.mrf.mxu0 }
 0x11c   : > { %597 = vst.msk [vmem:[%s1227_s28 + $0x48] sm:$0xff] %vm587_vm11, %v576_v35  ;;  %v564_v38 = vadd.f32 %v561_v32, %v491_v37  ;;  %v509_v39 = vpop.f32.mrf.mxu1 }
 0x11d   : > { %600 = vst.msk [vmem:[%s1227_s28 + $0x60] sm:$0xff] %vm587_vm11, %v581_v36  ;;  %v570_v40 = vadd.f32 %v561_v32, %v509_v39 }
 0x11e   : > { %589 = vst.msk [vmem:[%s1227_s28 + $0x8] sm:$0xff] %vm587_vm11, %v564_v38 }
 0x11f   : > { %593 = vst.msk [vmem:[%s1227_s28 + $0x28] sm:$0xff] %vm587_vm11, %v570_v40 }
 0x121   : > { %v530_v42 = vpop.f32.mrf.mxu2 }
 0x122   : > { %v577_v43 = vadd.f32 %v1250_v41, %v530_v42  ;;  %v545_v44 = vpop.f32.mrf.mxu3 }
 0x123   : > { %v582_v45 = vadd.f32 %v561_v32, %v545_v44 }
 0x124   : > { %608 = vst.msk [vmem:[%s1253_s8 + $0x20] sm:$0xff] %vm587_vm11, %v577_v43  ;;  %v494_v46 = vpop.f32.mrf.mxu0  ;;  %v512_v47 = vpop.f32.mrf.mxu1 }
 0x125   : > { %601 = vst.msk [vmem:[%s1227_s28 + $0x68] sm:$0xff] %vm587_vm11, %v582_v45  ;;  %v565_v48 = vadd.f32 %v1250_v41, %v494_v46  ;;  %v571_v49 = vadd.f32 %v1250_v41, %v512_v47 }
 0x127   : > { %604 = vst.msk [vmem:[%s1253_s8] sm:$0xff] %vm587_vm11, %v565_v48 }
 0x128   : > { %606 = vst.msk [vmem:[%s1253_s8 + $0x10] sm:$0xff] %vm587_vm11, %v571_v49 }
 0x12b   : > { %v548_v50 = vpop.f32.mrf.mxu3 }
 0x12c   : > { %v583_v51 = vadd.f32 %v1250_v41, %v548_v50  ;;  %v497_v52 = vpop.f32.mrf.mxu0 }
 0x12d   : > { %v566_v53 = vadd.f32 %v560_v25, %v497_v52 }
 0x12e   : > { %610 = vst.msk [vmem:[%s1253_s8 + $0x30] sm:$0xff] %vm587_vm11, %v583_v51 }
 0x12f   : > { %590 = vst.msk [vmem:[%s1227_s28 + $0x10] sm:$0xff] %vm587_vm11, %v566_v53 }
 0x131   : > { %v533_v54 = vpop.f32.mrf.mxu2 }
 0x132   : > { %v578_v55 = vadd.f32 %v560_v25, %v533_v54 }
 0x133   : > { %v551_v56 = vpop.f32.mrf.mxu3  ;;  %v515_v57 = vpop.f32.mrf.mxu1 }
 0x134   : > { %598 = vst.msk [vmem:[%s1227_s28 + $0x50] sm:$0xff] %vm587_vm11, %v578_v55  ;;  %v584_v58 = vadd.f32 %v560_v25, %v551_v56  ;;  %v572_v59 = vadd.f32 %v560_v25, %v515_v57 }
 0x136   : > { %602 = vst.msk [vmem:[%s1227_s28 + $0x70] sm:$0xff] %vm587_vm11, %v584_v58 }
 0x137   : > { %594 = vst.msk [vmem:[%s1227_s28 + $0x30] sm:$0xff] %vm587_vm11, %v572_v59 }
 0x13a   : > { %v536_v60 = vpop.f32.mrf.mxu2 }
 0x13b   : > { %v579_v61 = vadd.f32 %v561_v32, %v536_v60  ;;  %v554_v62 = vpop.f32.mrf.mxu3  ;;  %v500_v63 = vpop.f32.mrf.mxu0 }
 0x13c   : > { %v585_v0 = vadd.f32 %v561_v32, %v554_v62  ;;  %v567_v1 = vadd.f32 %v561_v32, %v500_v63  ;;  %v518_v2 = vpop.f32.mrf.mxu1 }
 0x13d   : > { %599 = vst.msk [vmem:[%s1227_s28 + $0x58] sm:$0xff] %vm587_vm11, %v579_v61  ;;  %v573_v3 = vadd.f32 %v561_v32, %v518_v2 }
 0x13e   : > { %603 = vst.msk [vmem:[%s1227_s28 + $0x78] sm:$0xff] %vm587_vm11, %v585_v0 }
 0x13f   : > { %591 = vst.msk [vmem:[%s1227_s28 + $0x18] sm:$0xff] %vm587_vm11, %v567_v1 }
 0x140   : > { %595 = vst.msk [vmem:[%s1227_s28 + $0x38] sm:$0xff] %vm587_vm11, %v573_v3 }
 0x141   : > { %931 = shalt.err (!%p928_p3)
}
 0x142   : > { %s1002_s19 = smov 128   ;;  %s1003_s28 = smov 8   ;;  %v539_v4 = vpop.f32.mrf.mxu2 }
 0x143   : > { %853 = dma.vmem_to_hbm [thread:$0]  (%p1067_p5), %s632_s13, 2048, %s634_s14, %s613_s23, %s1002_s19, %s1002_s19, %s1003_s28   ;;  %v580_v5 = vadd.f32 %v1250_v41, %v539_v4 }
 0x144   : > { %v503_v6 = vpop.f32.mrf.mxu0  ;;  %v521_v7 = vpop.f32.mrf.mxu1  ;;  %s647_s12 = scalar_lea.hbm %s1355_s4, %s813_s22  ;;  %s648_s13 = sshll.u32 %s1253_s8, 4  ;;  %s649_s13 = int_to_ptr.vmem [resolvable:$true] %s648_s13 }
 0x145   : > { %609 = vst.msk [vmem:[%s1253_s8 + $0x28] sm:$0xff] %vm587_vm11, %v580_v5  ;;  %v568_v8 = vadd.f32 %v1250_v41, %v503_v6  ;;  %v574_v9 = vadd.f32 %v1250_v41, %v521_v7  ;;  %s650_s14 = sshll.u32 %s647_s12, 4  ;;  %s618_s22 = scalar_lea.sflag [#allocation5], %s1221_s20  ;;  %s651_s14 = int_to_ptr.hbm [resolvable:$true] %s650_s14 }
 0x146   : > { %s946_s23 = sshra.s32 %s651_s14, 4  ;;  %s952_s5 = scalar_lea.hbm %s1355_s4, 128  ;;  %s947_s23 = int_to_ptr.hbm [resolvable:$true] %s946_s23 }
 0x147   : > { %605 = vst.msk [vmem:[%s1253_s8 + $0x8] sm:$0xff] %vm587_vm11, %v568_v8  ;;  %s948_s27 = scalar_lea.hbm %s947_s23, 64  ;;  %p953_p9 = scmp.lt.s32.totalorder %s947_s23, %s1355_s4 }
 0x148   : > { %607 = vst.msk [vmem:[%s1253_s8 + $0x18] sm:$0xff] %vm587_vm11, %v574_v9  ;;  %p949_p4 = scmp.ne.s32.totalorder %s947_s23, %s948_s27  ;;  %p954_p10 = scmp.lt.s32.totalorder %s952_s5, %s948_s27 }
 0x149   : > { %v557_v10 = vpop.f32.mrf.mxu3 }
 0x14a   : > { %v586_v11 = vadd.f32 %v1250_v41, %v557_v10  ;;  %p950_p7 = pnand %p949_p4, %p1067_p5  ;;  %p955_p11 = por %p954_p10, %p953_p9 }
 0x14c   : > { %611 = vst.msk [vmem:[%s1253_s8 + $0x38] sm:$0xff] %vm587_vm11, %v586_v11  ;;  %p951_p8 = pneg %p950_p7 }
 0x14e   : > { %p956_p12 = pnand %p955_p11, %p951_p8 }
 0x150   : > { %959 = shalt.err (!%p956_p12)
}
 0x151   : > { %854 = dma.vmem_to_hbm [thread:$0]  (%p1067_p5), %s649_s13, 1024, %s651_s14, %s618_s22, %s1002_s19, %s1002_s19, %s1003_s28  }
 0x152 PF: > { %p864_p13 = scmp.ge.s32.totalorder %s998_s18, 2  ;;  %s665_s20 = sand.u32 1, %s986_s15  }
 0x153   : > { %s666_s8 = scalar_lea.sflag [#allocation3], %s665_s20 }
 0x154   : > { %p858_p0 = pnand %p864_p13, %p1071_p6 }
 0x156   : > { %p859_p1 = pneg %p858_p0 }
 0x158   : > { %977 = dma.done.wait (%p859_p1), %s666_s8, 2048  }
 0x159   : > { %979 = vsyncadd (%p859_p1), %s666_s8, 4294965248  ;;  %s676_s9 = scalar_lea.sflag [#allocation5], %s665_s20 }
 0x15a   : > { %981 = dma.done.wait (%p859_p1), %s676_s9, 1024  }
 0x15b   : > { %983 = vsyncadd (%p859_p1), %s676_s9, 4294966272  ;;  %p18_p5 = scmp.ge.s32.totalorder %s1054_s21, 4   ;;  %s1358_s15 = smov %s990_s16 }
 0x15c   : > { %s1359_s16 = smov %s994_s17  ;;  %s1360_s17 = smov %s1065_s24 }
 0x15d   : > { %s1361_s18 = smov %s1054_s21  ;;  %20 = sbr.rel (!%p18_p5) target bundleno = 5 (0x5), region = 84 }
 0x162   :  { %682 = vsyncpa [#allocation3], 1 }
 0x163   :  { %684 = vsyncpa [#allocation3 + $0x1], 1 }
 0x164   :  { %685 = vsyncpa [#allocation5], 1 }
 0x165   :  { %687 = vsyncpa [#allocation5 + $0x1], 1 }

</bundles_post_ra>
